<compile_context>
chip_gen: v7x
topology: tpu7x:2x2x1
jax: 0.10.0
libtpu: 0.0.40
codegen_flags: <defaults>
</compile_context>

<pallas_src>
import functools

import jax
import jax.numpy as jnp
from jax.experimental import pallas as pl
from jax.experimental.pallas import tpu as pltpu

MASK_NUMBER = 0            # `mask_number` global in the reference file
SCORE_THRESH = 0.6
TARGET_CLASS = 1           # only class==1 detections are kept
SAM_TARGET_LENGTH = 1024   # SAM ResizeLongestSide target length


def _cdiv(a, b):
    return -(-a // b)


def _mask_select_kernel(keep_ref, logits_ref, out_ref):
    """Threshold the selected mask channel at 0 and gate by the keep mask."""
    # keep_ref:   [TN, 1]                 int8 (1 = kept detection, 0 = dropped)
    # logits_ref: [TN, T_HW] or [TN, H, W] mask logits in the model's native dtype
    # out_ref:    same shape as logits_ref, bool
    pos = logits_ref[...] > 0                      # sign test, exact in any dtype
    keep_row = keep_ref[...].astype(jnp.int32)     # [TN, 1]
    keep_row = keep_row.reshape((pos.shape[0],) + (1,) * (pos.ndim - 1))
    k = jnp.broadcast_to(keep_row, pos.shape) != 0
    out_ref[...] = jnp.logical_and(pos, k)         # bool store, no int32 intermediate


def _vmem_capacity_bytes():
    try:
        return int(pltpu.get_tpu_info().vmem_capacity_bytes)
    except Exception:
        return 64 << 20            # most conservative (v7x per-TensorCore VMEM)


def _keep_block_bytes(tn):
    # A (tn, 1) int8 VMEM block is lane/sublane padded to at least (32, 128).
    return max(tn, 32) * 128


def _plan_flat_tiles(n, hw, in_itemsize, budget_per_block):
    """Pick (tn, t_hw): t_hw divides hw and is a multiple of 128; tn multiple of 8."""
    per_elem = in_itemsize + 1                     # native-dtype input + bool output
    t_hw = hw
    while (8 * t_hw * per_elem > budget_per_block
           and t_hw % 2 == 0 and (t_hw // 2) % 128 == 0):
        t_hw //= 2
    tn = max(8, (budget_per_block // (t_hw * per_elem)) // 8 * 8)
    tn = min(tn, _cdiv(n, 8) * 8)
    # Guarantee >= 2 grid blocks so v7x's two TensorCores both get work.
    if _cdiv(n, tn) * (hw // t_hw) < 2:
        if t_hw % 256 == 0:
            t_hw //= 2
        elif n > 8:
            tn = max(8, _cdiv(_cdiv(n, 2), 8) * 8)
    return tn, t_hw


def _plan_row_tile(n, row_bytes, budget_per_block):
    tn = max(8, (budget_per_block // row_bytes) // 8 * 8)
    tn = min(tn, _cdiv(n, 8) * 8)
    if _cdiv(n, tn) < 2 and n > 8:
        tn = max(8, _cdiv(_cdiv(n, 2), 8) * 8)
    return tn


@functools.partial(jax.jit, static_argnames=("image_hw",))
def instance_segmenter_same(boxes, scores, classes, mask_logits, image_hw):
    """Pallas/XLA implementation of InstanceSegmenterSame.forward tensor path.

    Args:
      boxes:       [N, 4] f32, xyxy in original-image coordinates.
      scores:      [N]    f32, detector scores.
      classes:     [N]    i32, detector class ids.
      mask_logits: [N, M, H, W] SAM multimask logits per box (native dtype).
      image_hw:    (H_img, W_img) original image size (static).
    """
    n = boxes.shape[0]
    _, num_multimask, h, w = mask_logits.shape

    boxes = boxes.astype(jnp.float32)
    scores = scores.astype(jnp.float32)
    classes = classes.astype(jnp.int32)

    # ---- tiny per-detection work: plain XLA (sub-KB, not worth DMA setup) ----
    keep = jnp.logical_and(scores > SCORE_THRESH, classes == TARGET_CLASS)  # [N]
    keep_col = keep[:, None]

    # ResizeLongestSide.get_preprocess_shape (pure scalar glue, static).
    img_h, img_w = image_hw
    s = SAM_TARGET_LENGTH / max(img_h, img_w)
    new_h, new_w = int(img_h * s + 0.5), int(img_w * s + 0.5)
    scale = jnp.array([new_w / img_w, new_h / img_h,
                       new_w / img_w, new_h / img_h], dtype=jnp.float32)

    pred_boxes = jnp.where(keep_col, boxes, 0.0)            # NaN-safe masking
    transformed_boxes = jnp.where(keep_col, boxes * scale, 0.0)
    out_scores = jnp.where(keep, scores, 0.0)
    # Kept detections are relabeled to class 0; dropped rows tagged -1.
    pred_classes = jnp.where(keep, 0, -1).astype(jnp.int32)

    # ---- mask channel selection + thresholding: Pallas ----
    hw = h * w
    itemsize = mask_logits.dtype.itemsize
    cap = _vmem_capacity_bytes()
    budget_per_block = min(16 << 20, cap // 8)   # 16 MiB on v5e/v6e, 8 MiB on v7x

    if hw % 128 == 0:
        # Lane-dense path: flatten spatial dims (free metadata reshape); the
        # MASK_NUMBER channel is a contiguous, block-aligned slab of the
        # flattened [N, M*H*W] axis, selected entirely through the index_map.
        tn, t_hw = _plan_flat_tiles(n, hw, itemsize, budget_per_block)
        n_pad = _cdiv(n, tn) * tn
        keep_i8 = keep.astype(jnp.int8)[:, None]
        if n_pad != n:                                       # pad ONLY the tiny keep
            keep_i8 = jnp.pad(keep_i8, ((0, n_pad - n), (0, 0)))
        logits_flat = mask_logits.reshape(n, num_multimask * hw)
        blocks_per_channel = hw // t_hw
        grid = (_cdiv(n, tn), blocks_per_channel)

        in_tile = tn * t_hw * itemsize
        out_tile = tn * t_hw
        vmem_limit = int(min(2 * (in_tile + out_tile + _keep_block_bytes(tn))
                             + (8 << 20), cap * 3 // 4))

        masks = pl.pallas_call(
            _mask_select_kernel,
            out_shape=jax.ShapeDtypeStruct((n, hw), jnp.bool_),
            grid=grid,
            in_specs=[
                pl.BlockSpec((tn, 1), lambda i, j: (i, 0)),
                pl.BlockSpec(
                    (tn, t_hw),
                    lambda i, j: (i, MASK_NUMBER * blocks_per_channel + j)),
            ],
            out_specs=pl.BlockSpec((tn, t_hw), lambda i, j: (i, j)),
            compiler_params=pltpu.CompilerParams(
                dimension_semantics=("parallel", "parallel"),
                vmem_limit_bytes=vmem_limit),
        )(keep_i8, logits_flat)
        masks = masks.reshape(n, h, w)                       # free reshape back
    else:
        # Fallback for spatial sizes that are not 128-divisible when flattened:
        # 4-D blocking with full (H, W) spatial blocks, tiled over N only; the
        # M axis is pinned to MASK_NUMBER and squeezed out of the kernel ref.
        tn = _plan_row_tile(n, hw * (itemsize + 1), budget_per_block)
        n_pad = _cdiv(n, tn) * tn
        keep_i8 = keep.astype(jnp.int8)[:, None]
        if n_pad != n:
            keep_i8 = jnp.pad(keep_i8, ((0, n_pad - n), (0, 0)))

        in_tile = tn * hw * itemsize
        out_tile = tn * hw
        vmem_limit = int(min(2 * (in_tile + out_tile + _keep_block_bytes(tn))
                             + (8 << 20), cap * 3 // 4))

        masks = pl.pallas_call(
            _mask_select_kernel,
            out_shape=jax.ShapeDtypeStruct((n, h, w), jnp.bool_),
            grid=(_cdiv(n, tn),),
            in_specs=[
                pl.BlockSpec((tn, 1), lambda i: (i, 0)),
                pl.BlockSpec((tn, pl.Squeezed(), h, w),
                             lambda i: (i, MASK_NUMBER, 0, 0)),
            ],
            out_specs=pl.BlockSpec((tn, h, w), lambda i: (i, 0, 0)),
            compiler_params=pltpu.CompilerParams(
                dimension_semantics=("parallel",),
                vmem_limit_bytes=vmem_limit),
        )(keep_i8, mask_logits)

    return {
        "keep": keep,
        "pred_boxes": pred_boxes,
        "transformed_boxes": transformed_boxes,
        "scores": out_scores,
        "pred_classes": pred_classes,
        "pred_masks": masks,   # bool straight from the kernel (no extra pass)
    }
    # TODO(synk): the DETR predictor and the SAM image-encoder / mask-decoder
    # networks themselves (checkpointed models) are not reproducible as a
    # single Pallas kernel; their outputs are taken as inputs here.


if __name__ == "__main__":
    key = jax.random.PRNGKey(0)
    k_box, k_score, k_cls, k_mask = jax.random.split(key, 4)

    N, M, H, W = 8, 3, 32, 32          # detections, multimask channels, mask spatial
    IMAGE_HW = (480, 640)              # original image size fed to the predictor

    # Synthetic detector outputs (stand-ins for DefaultPredictor results).
    xy = jax.random.uniform(k_box, (N, 2, 2), minval=0.0,
                            maxval=float(min(IMAGE_HW))).sort(axis=1)
    boxes = xy.reshape(N, 4)                                   # xyxy
    scores = jax.random.uniform(k_score, (N,), minval=0.0, maxval=1.0)
    classes = jax.random.randint(k_cls, (N,), 0, 3, dtype=jnp.int32)
    # Synthetic SAM multimask logits for each box (native dtype, no upcast).
    mask_logits = jax.random.normal(k_mask, (N, M, H, W), dtype=jnp.float32)

    out = instance_segmenter_same(boxes, scores, classes, mask_logits, IMAGE_HW)
    jax.block_until_ready(out)

    # Lightweight sanity check against a pure-JAX reference of the same math.
    keep_ref = (scores > SCORE_THRESH) & (classes == TARGET_CLASS)
    assert bool(jnp.all(out["keep"] == keep_ref))

    ref_masks = (mask_logits[:, MASK_NUMBER] > 0.0) & keep_ref[:, None, None]
    assert out["pred_masks"].dtype == jnp.bool_
    assert out["pred_masks"].shape == (N, H, W)
    assert bool(jnp.all(out["pred_masks"] == ref_masks))

    s = SAM_TARGET_LENGTH / max(IMAGE_HW)
    new_h, new_w = int(IMAGE_HW[0] * s + 0.5), int(IMAGE_HW[1] * s + 0.5)
    scale_ref = jnp.array([new_w / IMAGE_HW[1], new_h / IMAGE_HW[0]] * 2,
                          dtype=jnp.float32)
    ref_tboxes = jnp.where(keep_ref[:, None], boxes * scale_ref, 0.0)
    assert bool(jnp.allclose(out["transformed_boxes"], ref_tboxes, atol=1e-5))
    assert bool(jnp.all(jnp.where(keep_ref,
                                  out["pred_classes"] == 0,
                                  out["pred_classes"] == -1)))

    print("KERNEL_OK")
</pallas_src>

<mosaic_0001>
module attributes {stable_mosaic.version = 11 : i64} {
  func.func @_mask_select_kernel(%arg0: i32, %arg1: i32, %arg2: memref<8x1xi8, #tpu.memory_space<vmem>>, %arg3: memref<8x512xf32, #tpu.memory_space<vmem>>, %arg4: memref<8x512xi32, #tpu.memory_space<vmem>>) attributes {dimension_semantics = [#tpu.dimension_semantics<parallel>, #tpu.dimension_semantics<parallel>], iteration_bounds = array<i64: 1, 2>, scalar_prefetch = 0 : i64, scratch_operands = 0 : i64, tpu.core_type = #tpu.core_type<tc>, window_params = [{transform_indices = @transform_0, window_bounds = array<i64: 8, 1>}, {transform_indices = @transform_1, window_bounds = array<i64: 8, 512>}, {transform_indices = @transform_2, window_bounds = array<i64: 8, 512>}]} {
    %c0 = arith.constant 0 : index
    %c0_0 = arith.constant 0 : index
    %0 = vector.load %arg3[%c0, %c0_0] : memref<8x512xf32, #tpu.memory_space<vmem>>, vector<8x512xf32>
    %cst = arith.constant 0.000000e+00 : f32
    %1 = vector.broadcast %cst : f32 to vector<8x512xf32>
    %2 = arith.cmpf ogt, %0, %1 : vector<8x512xf32>
    %c0_1 = arith.constant 0 : index
    %c0_2 = arith.constant 0 : index
    %3 = vector.load %arg2[%c0_1, %c0_2] : memref<8x1xi8, #tpu.memory_space<vmem>>, vector<8x1xi8>
    %4 = arith.extsi %3 : vector<8x1xi8> to vector<8x1xi32>
    %5 = vector.shape_cast %4 : vector<8x1xi32> to vector<8x1xi32>
    %6 = vector.broadcast %5 : vector<8x1xi32> to vector<8x512xi32>
    %c0_i32 = arith.constant 0 : i32
    %7 = vector.broadcast %c0_i32 : i32 to vector<8x512xi32>
    %8 = arith.cmpi ne, %6, %7 : vector<8x512xi32>
    %9 = arith.andi %2, %8 : vector<8x512xi1>
    %c0_3 = arith.constant 0 : index
    %c0_4 = arith.constant 0 : index
    %10 = vector.load %arg4[%c0_3, %c0_4] : memref<8x512xi32, #tpu.memory_space<vmem>>, vector<8x512xi32>
    %11 = arith.extui %9 : vector<8x512xi1> to vector<8x512xi32>
    %cst_5 = arith.constant dense<0> : vector<8x512xi32>
    %12 = arith.cmpi ne, %10, %cst_5 : vector<8x512xi32>
    tpu.vector_store %arg4[%c0_3, %c0_4], %11 {strides = array<i32>} : memref<8x512xi32, #tpu.memory_space<vmem>>, vector<8x512xi32>,
    return
  }
  func.func @transform_0(%arg0: i32, %arg1: i32) -> (i32, i32) {
    %c0_i32 = arith.constant 0 : i32
    %c0_i32_0 = arith.constant 0 : i32
    return %arg0, %c0_i32 : i32, i32
  }
  func.func @transform_1(%arg0: i32, %arg1: i32) -> (i32, i32) {
    %c0_i32 = arith.constant 0 : i32
    %0 = arith.addi %c0_i32, %arg1 : i32
    %c0_i32_0 = arith.constant 0 : i32
    return %arg0, %0 : i32, i32
  }
  func.func @transform_2(%arg0: i32, %arg1: i32) -> (i32, i32) {
    %c0_i32 = arith.constant 0 : i32
    return %arg0, %arg1 : i32, i32
  }
}

</mosaic_0001>

<bundles_post_ra>
// kernel: instance_segmenter_same.1
= control target key start
LH: loop header
LB: loop body
LE: loop exit
PB: predicated region body
PF: predicated region fallthrough
CT: control target
= control target key end

     0   :  { %s406_s9 = smov 0   ;;  %s408_s10 = smov 0   ;;  %s442_s0 = inlined_call_operand.vmem [shape: s8[8,1], index: 0, kind: input, shape index: {}]   ;;  %s443_s1 = inlined_call_operand.vmem [shape: f32[8,3072], index: 1, kind: input, shape index: {}]   ;;  %s444_s2 = inlined_call_operand.vmem [shape: s32[8,1024], index: 2, kind: output, shape index: {}]  }
   0x1   :  { %s410_s11 = smov 0  }
   0x2 LB: > { %s21_s12 = sadd.s32 1, %s384_s10  ;;  %p333_p0 = scmp.ge.s32.totalorder %s388_s11, 1  ;;  %s388_s11 = sphi %s410_s11, %s12_s11   ;;  %s384_s10 = sphi %s408_s10, %s446_s10   ;;  %s380_s9 = sphi %s406_s9, %s445_s9  }
   0x3   : > { %p22_p1 = scmp.ge.s32.totalorder %s21_s12, 2  ;;  %p142_p2 = scmp.lt.s32.totalorder %s388_s11, 3 }
   0x5   : > { %s448_s12 = smov (%p22_p1, %s21_s12), 0  ;;  %p143_p3 = pnand %p333_p0, %p142_p2 }
   0x6   : > { %v208_v0 = vld [vmem:[%s442_s0] sm:$0x3] (!%p143_p3)  ;;  %v390_v1 = vmov (!%p143_p3), 0   ;;  %s334_s15 = sshll.u32 (!%p143_p3), %s380_s9, 2 }
   0x7   : > { %146 = sbr.rel (%p143_p3) target bundleno = 144 (0x90), region = 28  ;;  %365 = vset.pattern.permute.xlu0 (!%p143_p3), %v390_v1  ;;  %v209_v2 = vunpack.c.0.s8 (!%p143_p3), %v208_v0  ;;  %p183_p4 = scmp.lt.s32.totalorder (!%p143_p3), %s334_s15, 23 }
   0x8   : > { %p193_p5 = scmp.lt.s32.totalorder (!%p143_p3), %s334_s15, 7 }
   0x9   : > { %211 = vperm.xlu0 (!%p143_p3), %365, %v209_v2  }
   0xe   : > { %s184_s16 = scalar_select %p183_p4, %s334_s15, 23 }
   0xf   : > { %s450_s15 = smov (!%p193_p5, %s334_s15), 7 }
  0x10   : > { %s335_s17 = sshll.u32 %s184_s16, 3  ;;  %s337_s21 = sshll.u32 %s450_s15, 3 }
  0x11   : > { %s188_s20 = scalar_lea.vmem %s443_s1, %s335_s17  ;;  %s198_s24 = scalar_lea.vmem %s444_s2, %s337_s21 }
  0x12   : > { %v200_v3 = vld [vmem:[%s188_s20] sm:$0xff]  ;;  %v201_v4 = vld [vmem:[%s188_s20 + $0x8] sm:$0xff]  ;;  %v202_v5 = vld [vmem:[%s188_s20 + $0x10] sm:$0xff] }
  0x13   : > { %v203_v6 = vld [vmem:[%s188_s20 + $0x18] sm:$0xff]  ;;  %vm204_vm0 = vcmp.gt.f32.partialorder %v200_v3, 0.0  ;;  %vm205_vm1 = vcmp.gt.f32.partialorder %v201_v4, 0.0  ;;  %vm206_vm2 = vcmp.gt.f32.partialorder %v202_v5, 0.0 }
  0x14   : > { %vm207_vm4 = vcmp.gt.f32.partialorder %v203_v6, 0.0 }
  0x88   : > { %v212_v7 = vpop.permute.xlu0 %211 }
  0x89   : > { %vm213_vm3 = vcmp.ne.s32.totalorder %v212_v7, 0 }
  0x8a   : > { %vm214_vm5 = vmand %vm204_vm0, %vm213_vm3 }
  0x8b   : > { %vm215_vm6 = vmand %vm205_vm1, %vm213_vm3  ;;  %v218_v8 = vsel %vm214_vm5, 1, %v390_v1 }
  0x8c   : > { %vm216_vm7 = vmand %vm206_vm2, %vm213_vm3  ;;  %v219_v9 = vsel %vm215_vm6, 1, %v390_v1  ;;  %222 = vst [vmem:[%s198_s24] sm:$0xff] %v218_v8 }
  0x8d   : > { %vm217_vm8 = vmand %vm207_vm4, %vm213_vm3  ;;  %v220_v10 = vsel %vm216_vm7, 1, %v390_v1  ;;  %223 = vst [vmem:[%s198_s24 + $0x8] sm:$0xff] %v219_v9 }
  0x8e   : > { %v221_v11 = vsel %vm217_vm8, 1, %v390_v1  ;;  %224 = vst [vmem:[%s198_s24 + $0x10] sm:$0xff] %v220_v10 }
  0x8f   : > { %225 = vst [vmem:[%s198_s24 + $0x18] sm:$0xff] %v221_v11 }
  0x90 PF: > { %s12_s11 = sadd.s32 1, %s388_s11   ;;  %s445_s9 = smov %s384_s10 }
  0x91   : > { %p9_p6 = scmp.ge.s32.totalorder %s12_s11, 4   ;;  %s446_s10 = smov %s448_s12 }
  0x93   :  { %11 = sbr.rel (!%p9_p6) target bundleno = 2 (0x2), region = 61 }

</bundles_post_ra>
